<compile_context>
chip_gen: v7x
topology: tpu7x:2x2x1
jax: 0.10.0
libtpu: 0.0.40
codegen_flags: <defaults>
</compile_context>

<pallas_src>
import jax
import jax.numpy as jnp
from jax.experimental import pallas as pl
from jax.experimental.pallas import tpu as pltpu


def _identity_kernel(img_ref, out_ref):
    # Forward pass: return self.image  ->  out = image (element-wise copy).
    out_ref[...] = img_ref[...]


@jax.jit
def image_forward(image: jax.Array) -> jax.Array:
    """Equivalent of Image.forward(): returns the (1, 28, 28) image parameter."""
    return pl.pallas_call(
        _identity_kernel,
        out_shape=jax.ShapeDtypeStruct(image.shape, image.dtype),
        # Grid-less: the whole (1, 28, 28) tensor is a single VMEM-resident
        # block (pads to one (32, 128) f32 tile = 4 vregs / 16 KiB).
        in_specs=[pl.BlockSpec(memory_space=pltpu.MemorySpace.VMEM)],
        out_specs=pl.BlockSpec(memory_space=pltpu.MemorySpace.VMEM),
        # No input/output aliasing: the learnable parameter must stay live
        # (e.g. for an optimizer update); do not donate its buffer.
    )(image)


if __name__ == "__main__":
    # Deterministic parameter init, matching nn.Parameter(torch.randn((1, 28, 28))).
    key = jax.random.PRNGKey(0)
    image_param = jax.random.normal(key, (1, 28, 28), dtype=jnp.float32)

    out = image_forward(image_param)
    out = jax.block_until_ready(out)

    assert out.shape == (1, 28, 28)
    assert out.dtype == jnp.float32
    # No donation: the input parameter is still valid and must equal the output.
    assert bool(jnp.allclose(out, image_param)), "kernel output != parameter"

    print("KERNEL_OK")
</pallas_src>

<mosaic_0001>
module attributes {stable_mosaic.version = 11 : i64} {
  func.func @_identity_kernel(%arg0: memref<1x28x28xf32, #tpu.memory_space<vmem>>, %arg1: memref<1x28x28xf32, #tpu.memory_space<vmem>>) attributes {dimension_semantics = [], scalar_prefetch = 0 : i64, scratch_operands = 0 : i64, tpu.core_type = #tpu.core_type<tc>} {
    %c0 = arith.constant 0 : index
    %c0_0 = arith.constant 0 : index
    %c0_1 = arith.constant 0 : index
    %0 = vector.load %arg0[%c0, %c0_0, %c0_1] : memref<1x28x28xf32, #tpu.memory_space<vmem>>, vector<1x28x28xf32>
    %c0_2 = arith.constant 0 : index
    %c0_3 = arith.constant 0 : index
    %c0_4 = arith.constant 0 : index
    %1 = vector.load %arg1[%c0_2, %c0_3, %c0_4] : memref<1x28x28xf32, #tpu.memory_space<vmem>>, vector<1x28x28xf32>
    tpu.vector_store %arg1[%c0_2, %c0_3, %c0_4], %0 {strides = array<i32>} : memref<1x28x28xf32, #tpu.memory_space<vmem>>, vector<1x28x28xf32>,
    return
  }
}

</mosaic_0001>

<bundles_post_ra>
// kernel: image_forward.1
= control target key start
LH: loop header
LB: loop body
LE: loop exit
PB: predicated region body
PF: predicated region fallthrough
CT: control target
= control target key end

     0   :  { %vm12_vm0 = vcmask 228352   ;;  %vm16_vm1 = vcmask 224256   ;;  %s56_s0 = inlined_call_operand.vmem [shape: f32[1,28,28], index: 0, kind: input, shape index: {}]   ;;  %s57_s1 = inlined_call_operand.vmem [shape: f32[1,28,28], index: 1, kind: output, shape index: {}]  }
   0x1   :  { %v8_v0 = vld [vmem:[%s56_s0] sm:$0xff]  ;;  %v9_v1 = vld [vmem:[%s56_s0 + $0x8] sm:$0xff]  ;;  %v10_v2 = vld [vmem:[%s56_s0 + $0x10] sm:$0xff] }
   0x2   :  { %13 = vst.msk [vmem:[%s57_s1] sm:$0xff] %vm12_vm0, %v8_v0  ;;  %14 = vst.msk [vmem:[%s57_s1 + $0x8] sm:$0xff] %vm12_vm0, %v9_v1  ;;  %v11_v3 = vld [vmem:[%s56_s0 + $0x18] sm:$0xf] }
   0x3   :  { %15 = vst.msk [vmem:[%s57_s1 + $0x10] sm:$0xff] %vm12_vm0, %v10_v2 }
   0x4   :  { %17 = vst.msk [vmem:[%s57_s1 + $0x18] sm:$0xf] %vm16_vm1, %v11_v3 }

</bundles_post_ra>
